<compile_context>
chip_gen: v6e
topology: v6e:2x2x1
jax: 0.10.0
libtpu: 0.0.40
codegen_flags: <defaults>
</compile_context>

<pallas_src>
import functools

import numpy as np
import jax
import jax.numpy as jnp
from jax import lax
from jax.experimental import pallas as pl
from jax.experimental.pallas import tpu as pltpu


# ----------------------------- helpers --------------------------------------

def _vmem_capacity_bytes():
    """Physical VMEM of the local chip generation (fallback: v7x's 64 MiB)."""
    try:
        return int(pltpu.get_tpu_info().vmem_capacity_bytes)
    except Exception:
        return 64 * 2**20


def _compiler_params(sem, est_bytes, cap):
    # Explicit VMEM budget from the size estimate, clamped to ~85% of the
    # generation's physical VMEM (54 MiB on v7x, ~108 MiB on v5e/v6e).
    vmem = int(min(max(est_bytes, 16 * 2**20), int(0.85 * cap)))
    return pltpu.CompilerParams(dimension_semantics=sem, vmem_limit_bytes=vmem)


def _pick_tile(Np, C, target_bytes):
    """Largest multiple of 128 dividing Np whose (C, tile) f32 slab <= target."""
    target = max(128, min(Np, target_bytes // max(4 * C, 1)))
    t = (target // 128) * 128
    while t >= 128:
        if Np % t == 0:
            return t
        t -= 128
    return Np


def _softmax_cam(energy):
    """softmax(rowmax(E) - E, axis=-1) for f32 E.

    softmax is shift invariant, so this equals softmax(-E).  The stable form
    exp(rowmin(E) - E) / sum needs only ONE cross-lane row reduction (instead
    of rowmax(E) followed by rowmax(E_new)) and its exp argument matches what
    jax.nn.softmax computes for rowmax(E) - E.  The reduction itself cannot be
    dropped: rowmax(E_new) is the row range of E (not 0), so an unstabilized
    exp would overflow for realistic energies.
    """
    mn = jnp.min(energy, axis=-1, keepdims=True)
    p = jnp.exp(mn - energy)
    denom = jnp.sum(p, axis=-1, keepdims=True)
    return p / denom          # exact divide: once per (C, C) epilogue, ~free


# ----------------------------- kernels --------------------------------------

def _cam_fused_kernel(x_ref, gamma_ref, o_ref, *, chunk, n_chunks, unroll):
    # x: (C, Np) f32 resident in VMEM; gamma: SMEM (1, 1); out: (C, Np).
    C = x_ref.shape[0]

    def energy_step(c, acc):
        s = pl.multiple_of(c * chunk, 128)
        xb = x_ref[:, pl.ds(s, chunk)].astype(jnp.bfloat16)     # bf16 MXU operands
        return acc + lax.dot_general(                            # energy += x_c @ x_c^T
            xb, xb, (((1,), (1,)), ((), ())),
            preferred_element_type=jnp.float32)

    energy = lax.fori_loop(0, n_chunks, energy_step,
                           jnp.zeros((C, C), jnp.float32), unroll=unroll)
    attn_b = _softmax_cam(energy).astype(jnp.bfloat16)           # (C, C) bf16
    gamma = gamma_ref[0, 0]

    # Stream attention @ x and the gamma*out + x epilogue over N chunks so no
    # full-(C, Np) temporary (bf16 copy or f32 matmul result) is materialized.
    @pl.loop(0, n_chunks, unroll=unroll)
    def _(c):
        s = pl.multiple_of(c * chunk, 128)
        xc = x_ref[:, pl.ds(s, chunk)]                           # (C, chunk) f32
        outc = lax.dot_general(
            attn_b, xc.astype(jnp.bfloat16), (((1,), (0,)), ((), ())),
            preferred_element_type=jnp.float32)
        o_ref[:, pl.ds(s, chunk)] = (gamma * outc + xc).astype(o_ref.dtype)


def _cam_attn_kernel(x_ref, attn_ref, acc_ref):
    # x tile: (C, tn) f32; attn out: (C, C) bf16; acc scratch: (C, C) f32.
    t = pl.program_id(1)

    @pl.when(t == 0)
    def _():
        acc_ref[...] = jnp.zeros_like(acc_ref)

    xb = x_ref[...].astype(jnp.bfloat16)
    acc_ref[...] += lax.dot_general(                             # energy += x_t @ x_t^T
        xb, xb, (((1,), (1,)), ((), ())),
        preferred_element_type=jnp.float32)

    @pl.when(t == pl.num_programs(1) - 1)
    def _():
        attn_ref[...] = _softmax_cam(acc_ref[...]).astype(attn_ref.dtype)


def _cam_apply_kernel(attn_ref, x_ref, gamma_ref, o_ref):
    # attn: (C, C) bf16 (already MXU-ready, no per-tile cast); x tile: (C, tn).
    x = x_ref[...]
    out = lax.dot_general(
        attn_ref[...], x.astype(jnp.bfloat16), (((1,), (0,)), ((), ())),
        preferred_element_type=jnp.float32)
    o_ref[...] = (gamma_ref[0, 0] * out + x).astype(o_ref.dtype)


# ----------------------------- pallas_call wrappers --------------------------

def _cam_fused(x_flat, gamma, chunk, n_chunks, est_bytes, cap):
    B, C, Np = x_flat.shape
    kernel = functools.partial(_cam_fused_kernel, chunk=chunk,
                               n_chunks=n_chunks, unroll=n_chunks <= 8)
    return pl.pallas_call(
        kernel,
        out_shape=jax.ShapeDtypeStruct((B, C, Np), x_flat.dtype),
        grid=(B,),
        in_specs=[
            pl.BlockSpec((None, C, Np), lambda b: (b, 0, 0)),
            pl.BlockSpec(memory_space=pltpu.MemorySpace.SMEM),
        ],
        out_specs=pl.BlockSpec((None, C, Np), lambda b: (b, 0, 0)),
        compiler_params=_compiler_params(("parallel",), est_bytes, cap),
        cost_estimate=pl.CostEstimate(
            flops=4 * B * C * C * Np,
            transcendentals=B * C * C,
            bytes_accessed=2 * B * C * Np * 4),
    )(x_flat, gamma)


def _cam_attention(x_flat, tile_n, est_bytes, cap):
    B, C, Np = x_flat.shape
    nt = Np // tile_n
    return pl.pallas_call(
        _cam_attn_kernel,
        out_shape=jax.ShapeDtypeStruct((B, C, C), jnp.bfloat16),
        grid=(B, nt),
        in_specs=[pl.BlockSpec((None, C, tile_n), lambda b, t: (b, 0, t))],
        out_specs=pl.BlockSpec((None, C, C), lambda b, t: (b, 0, 0)),
        scratch_shapes=[pltpu.VMEM((C, C), jnp.float32)],
        compiler_params=_compiler_params(("parallel", "arbitrary"),
                                         est_bytes, cap),
        cost_estimate=pl.CostEstimate(
            flops=2 * B * C * C * Np,
            transcendentals=B * C * C,
            bytes_accessed=B * C * Np * 4 + B * C * C * 2),
    )(x_flat)


def _cam_apply(attn, x_flat, gamma, tile_n, est_bytes, cap):
    B, C, Np = x_flat.shape
    nt = Np // tile_n
    return pl.pallas_call(
        _cam_apply_kernel,
        out_shape=jax.ShapeDtypeStruct((B, C, Np), x_flat.dtype),
        grid=(B, nt),
        in_specs=[
            pl.BlockSpec((None, C, C), lambda b, t: (b, 0, 0)),
            pl.BlockSpec((None, C, tile_n), lambda b, t: (b, 0, t)),
            pl.BlockSpec(memory_space=pltpu.MemorySpace.SMEM),
        ],
        out_specs=pl.BlockSpec((None, C, tile_n), lambda b, t: (b, 0, t)),
        compiler_params=_compiler_params(("parallel", "parallel"),
                                         est_bytes, cap),
        cost_estimate=pl.CostEstimate(
            flops=2 * B * C * C * Np,
            transcendentals=0,
            bytes_accessed=2 * B * C * Np * 4 + B * C * C * 2),
    )(attn, x_flat, gamma)


# ----------------------------- forward --------------------------------------

def cam_forward(x, gamma, *, tile_n=None, fused_chunk=None):
    """CAM_Module.forward.  x: (B, C, H, W), gamma: scalar.  Returns (B, C, H, W)."""
    B, C, H, W = x.shape
    N = H * W
    x_flat = x.reshape(B, C, N)

    # Zero-pad the flattened pixel axis to a lane multiple (zero pixels add
    # nothing to energy or attention @ x) -> lane-dense tiles, unmasked stores.
    Np = ((N + 127) // 128) * 128
    if Np != N:
        x_flat = jnp.pad(x_flat, ((0, 0), (0, 0), (0, Np - N)))

    gamma_arr = jnp.asarray(gamma, jnp.float32).reshape(1, 1)
    cap = _vmem_capacity_bytes()

    # Fused single-pass kernel (one HBM read of x) whenever the per-batch
    # working set fits the local generation's VMEM.
    chunk = fused_chunk if fused_chunk is not None else _pick_tile(Np, C, 2 * 2**20)
    if Np % chunk != 0:
        chunk = _pick_tile(Np, C, 4 * C * chunk)
    n_chunks = Np // chunk
    est_fused = 16 * C * Np + 10 * C * chunk + 8 * C * C + (2 << 20)

    if tile_n is None and est_fused <= int(0.75 * cap):
        out = _cam_fused(x_flat, gamma_arr, chunk, n_chunks, est_fused, cap)
    else:
        # Two streamed passes over lane-dense (C, tile_n) tiles; the only HBM
        # intermediate is the small (B, C, C) bf16 attention matrix.
        tn = tile_n if tile_n is not None else _pick_tile(
            Np, C, 8 * 2**20 if cap >= 96 * 2**20 else 4 * 2**20)
        if Np % tn != 0:
            tn = _pick_tile(Np, C, 4 * C * tn)
        est_attn = 12 * C * tn + 12 * C * C + (2 << 20)
        est_apply = 24 * C * tn + 6 * C * C + (2 << 20)
        attn = _cam_attention(x_flat, tn, est_attn, cap)
        out = _cam_apply(attn, x_flat, gamma_arr, tn, est_apply, cap)

    if Np != N:
        out = out[:, :, :N]
    return out.reshape(B, C, H, W)


# ----------------------------- reference ------------------------------------

def cam_reference(x, gamma):
    """Pure-JAX reference mirroring the kernel numerics (bf16 MXU operands,
    f32 accumulation, exact softmax).  The PyTorch module is f32 end-to-end;
    see TODO at the top of the file."""
    B, C, H, W = x.shape
    xf = x.reshape(B, C, H * W).astype(jnp.float32)
    xb = xf.astype(jnp.bfloat16)
    energy = jnp.einsum("bcn,bdn->bcd", xb, xb,
                        preferred_element_type=jnp.float32)
    e_new = jnp.max(energy, axis=-1, keepdims=True) - energy
    attn = jax.nn.softmax(e_new, axis=-1)
    out = jnp.einsum("bcd,bdn->bcn", attn.astype(jnp.bfloat16), xb,
                     preferred_element_type=jnp.float32)
    out = jnp.float32(gamma) * out + xf
    return out.reshape(B, C, H, W)


if __name__ == "__main__":
    key = jax.random.PRNGKey(0)
    B, C, H, W = 2, 32, 16, 16
    # Moderate input scale keeps the (exponentially input-sensitive) channel
    # softmax well conditioned, so the bf16-MXU kernel and the bf16 XLA
    # reference agree to the tolerance below on real hardware.
    x = 0.5 * jax.random.normal(key, (B, C, H, W), jnp.float32)

    TOL = dict(rtol=2e-2, atol=2e-2)
    # gamma = 0.0 matches the PyTorch init (torch.zeros(1)); gamma = 0.7
    # exercises the attention branch.
    for gamma in (0.0, 0.7):
        ref = jax.block_until_ready(cam_reference(x, gamma))

        # Default: fused single-pass kernel.
        out_fused = jax.block_until_ready(cam_forward(x, gamma))
        np.testing.assert_allclose(np.asarray(out_fused), np.asarray(ref), **TOL)

        # Fused kernel with the in-kernel N-chunk streaming loop exercised.
        out_chunked = jax.block_until_ready(cam_forward(x, gamma, fused_chunk=128))
        np.testing.assert_allclose(np.asarray(out_chunked), np.asarray(ref), **TOL)

        # Streamed two-pass path (attention pass + apply pass), small tile to
        # exercise multi-step grids at this toy size.
        out_tiled = jax.block_until_ready(cam_forward(x, gamma, tile_n=128))
        np.testing.assert_allclose(np.asarray(out_tiled), np.asarray(ref), **TOL)

    print("KERNEL_OK")
</pallas_src>

<mosaic_0001>
module attributes {stable_mosaic.version = 11 : i64} {
  func.func @_cam_fused_kernel(%arg0: i32, %arg1: memref<1x32x256xf32, #tpu.memory_space<vmem>>, %arg2: memref<1x1xf32, #tpu.memory_space<smem>>, %arg3: memref<1x32x256xf32, #tpu.memory_space<vmem>>) attributes {dimension_semantics = [#tpu.dimension_semantics<parallel>], iteration_bounds = array<i64: 2>, scalar_prefetch = 0 : i64, scratch_operands = 0 : i64, tpu.core_type = #tpu.core_type<tc>, window_params = [{transform_indices = @transform_0, window_bounds = array<i64: 1, 32, 256>}, {transform_indices = @transform_1, window_bounds = array<i64: 1, 1>}, {transform_indices = @transform_2, window_bounds = array<i64: 1, 32, 256>}]} {
    %cst = arith.constant 0.000000e+00 : f32
    %0 = vector.broadcast %cst : f32 to vector<32x32xf32>
    %c0_i32 = arith.constant 0 : i32
    %c256_i32 = arith.constant 256 : i32
    %1 = arith.muli %c0_i32, %c256_i32 : i32
    %2 = tpu.assume_multiple %1, 128 : i32
    %c0 = arith.constant 0 : index
    %c0_0 = arith.constant 0 : index
    %3 = arith.index_cast %2 : i32 to index
    %4 = vector.load %arg1[%c0, %c0_0, %3] : memref<1x32x256xf32, #tpu.memory_space<vmem>>, vector<1x32x256xf32>
    %5 = vector.shape_cast %4 : vector<1x32x256xf32> to vector<32x256xf32>
    %6 = arith.truncf %5 : vector<32x256xf32> to vector<32x256xbf16>
    %cst_1 = arith.constant dense<0.000000e+00> : vector<32x32xf32>
    %7 = tpu.matmul %6, %6, %cst_1 {dimension_numbers = #tpu.dot_dimension_numbers<[1], [1], [0], [0], [0, 0, 1, 0], [], []>} : vector<32x256xbf16>, vector<32x256xbf16>, vector<32x32xf32> -> vector<32x32xf32>
    %8 = arith.addf %0, %7 : vector<32x32xf32>
    %c1_i32 = arith.constant 1 : i32
    %cst_2 = arith.constant dense<0x7F800000> : vector<32xf32>
    %9 = vector.multi_reduction <minimumf>, %8, %cst_2 [1] : vector<32x32xf32> to vector<32xf32>
    %10 = vector.shape_cast %9 : vector<32xf32> to vector<32x1xf32>
    %11 = vector.broadcast %10 : vector<32x1xf32> to vector<32x32xf32>
    %12 = arith.subf %11, %8 : vector<32x32xf32>
    %13 = math.exp %12 : vector<32x32xf32>
    %cst_3 = arith.constant dense<0.000000e+00> : vector<32xf32>
    %14 = vector.multi_reduction <add>, %13, %cst_3 [1] : vector<32x32xf32> to vector<32xf32>
    %15 = vector.shape_cast %14 : vector<32xf32> to vector<32x1xf32>
    %16 = vector.broadcast %15 : vector<32x1xf32> to vector<32x32xf32>
    %17 = arith.divf %13, %16 : vector<32x32xf32>
    %18 = arith.truncf %17 : vector<32x32xf32> to vector<32x32xbf16>
    %c0_4 = arith.constant 0 : index
    %c0_5 = arith.constant 0 : index
    %19 = memref.load %arg2[%c0_4, %c0_5] : memref<1x1xf32, #tpu.memory_space<smem>>
    %c0_i32_6 = arith.constant 0 : i32
    %c1_i32_7 = arith.constant 1 : i32
    %20 = arith.muli %c0_i32_6, %c1_i32_7 : i32
    %c0_i32_8 = arith.constant 0 : i32
    %21 = arith.addi %c0_i32_8, %20 : i32
    %c256_i32_9 = arith.constant 256 : i32
    %22 = arith.muli %21, %c256_i32_9 : i32
    %23 = tpu.assume_multiple %22, 128 : i32
    %c0_10 = arith.constant 0 : index
    %c0_11 = arith.constant 0 : index
    %24 = arith.index_cast %23 : i32 to index
    %25 = vector.load %arg1[%c0_10, %c0_11, %24] : memref<1x32x256xf32, #tpu.memory_space<vmem>>, vector<1x32x256xf32>
    %26 = vector.shape_cast %25 : vector<1x32x256xf32> to vector<32x256xf32>
    %27 = arith.truncf %26 : vector<32x256xf32> to vector<32x256xbf16>
    %cst_12 = arith.constant dense<0.000000e+00> : vector<32x256xf32>
    %28 = tpu.matmul %18, %27, %cst_12 {dimension_numbers = #tpu.dot_dimension_numbers<[1], [0], [0], [1], [0, 0, 1, 1], [], []>} : vector<32x32xbf16>, vector<32x256xbf16>, vector<32x256xf32> -> vector<32x256xf32>
    %29 = vector.broadcast %19 : f32 to vector<32x256xf32>
    %30 = arith.mulf %29, %28 : vector<32x256xf32>
    %31 = arith.addf %30, %26 : vector<32x256xf32>
    %c0_13 = arith.constant 0 : index
    %c0_14 = arith.constant 0 : index
    %32 = arith.index_cast %23 : i32 to index
    %33 = vector.load %arg3[%c0_13, %c0_14, %32] : memref<1x32x256xf32, #tpu.memory_space<vmem>>, vector<1x32x256xf32>
    %34 = vector.shape_cast %33 : vector<1x32x256xf32> to vector<32x256xf32>
    %35 = vector.shape_cast %31 : vector<32x256xf32> to vector<1x32x256xf32>
    tpu.vector_store %arg3[%c0_13, %c0_14, %32], %35 {strides = array<i32>} : memref<1x32x256xf32, #tpu.memory_space<vmem>>, vector<1x32x256xf32>,
    %c1_i32_15 = arith.constant 1 : i32
    return
  }
  func.func @transform_0(%arg0: i32) -> (i32, i32, i32) {
    %c0_i32 = arith.constant 0 : i32
    %c0_i32_0 = arith.constant 0 : i32
    %c0_i32_1 = arith.constant 0 : i32
    return %arg0, %c0_i32, %c0_i32_0 : i32, i32, i32
  }
  func.func @transform_1(%arg0: i32) -> (i32, i32) {
    %c0_i32 = arith.constant 0 : i32
    %c0_i32_0 = arith.constant 0 : i32
    %c0_i32_1 = arith.constant 0 : i32
    return %c0_i32, %c0_i32_0 : i32, i32
  }
  func.func @transform_2(%arg0: i32) -> (i32, i32, i32) {
    %c0_i32 = arith.constant 0 : i32
    %c0_i32_0 = arith.constant 0 : i32
    %c0_i32_1 = arith.constant 0 : i32
    return %arg0, %c0_i32, %c0_i32_0 : i32, i32, i32
  }
}

</mosaic_0001>

<bundles_post_ra>
// kernel: tpu_custom_call.1
= control target key start
LH: loop header
LB: loop body
LE: loop exit
PB: predicated region body
PF: predicated region fallthrough
CT: control target
= control target key end

     0   :  { %s848_s0 = inlined_call_operand.hbm [shape: f32[2,32,256], index: 0, kind: input, shape index: {}]   ;;  %s849_s1 = inlined_call_operand.<no memory space> [shape: f32[1,1], index: 1, kind: input, shape index: {}]   ;;  %s850_s2 = inlined_call_operand.hbm [shape: f32[2,32,256], index: 2, kind: output, shape index: {}]  }
   0x1   :  { %7 = sst [smem:[#allocation2]] %s849_s1 }
   0x2   :  { %8 = vsyncpa [#allocation4], 0 }
   0x3   :  { %10 = vsyncpa [#allocation4 + $0x1], 0 }
   0x4   :  { %11 = vsyncpa [#allocation5], 0 }
   0x5   :  { %13 = vsyncpa [#allocation5 + $0x1], 0  ;;  %s648_s11 = smov 0   ;;  %s650_s12 = smov 0  }
   0x6   :  { %s652_s13 = smov 0   ;;  %s654_s14 = smov 0  }
   0x7 LB: > { %s669_s1 = sadd.s32 4294967295, %s621_s14   ;;  %s444_s15 = sadd.s32 4294967294, %s621_s14   ;;  %s621_s14 = sphi %s654_s14, %s865_s14   ;;  %s617_s13 = sphi %s652_s13, %s864_s13   ;;  %s613_s12 = sphi %s650_s12, %s863_s12   ;;  %s609_s11 = sphi %s648_s11, %s862_s11  }
   0x8   : > { %s673_s16 = sadd.s32 1, %s621_s14   ;;  %s26_s17 = sadd.s32 1, %s617_s13 }
   0x9   : > { %s23_s18 = ssub.s32 %s621_s14, %s673_s16  ;;  %p33_p0 = scmp.ne.s32.totalorder %s617_s13, %s613_s12 }
   0xa   : > { %p24_p1 = scmp.eq.s32.totalorder %s23_s18, 0  ;;  %p34_p2 = scmp.eq.s32.totalorder %s621_s14, 0 }
   0xb   : > { %p39_p3 = scmp.ne.s32.totalorder %s613_s12, %s609_s11  ;;  %p40_p4 = scmp.eq.s32.totalorder %s669_s1, 0 }
   0xc   : > { %s685_s19 = scalar_select %p24_p1, %s617_s13, %s26_s17  }
   0xd   : > { %p687_p5 = por %p34_p2, %p33_p0  ;;  %p691_p6 = por %p40_p4, %p39_p3 }
   0xe   : > { %p84_p7 = scmp.eq.s32.totalorder %s669_s1, 1  ;;  %p90_p8 = scmp.eq.s32.totalorder %s444_s15, 1 }
   0xf   : > { %s854_s21 = scalar_select %p691_p6, 1, 0 }
  0x10   : > { %p474_p10 = scmp.lt.s32.totalorder %s621_s14, 2  ;;  %p698_p11 = por %p84_p7, %p33_p0 }
  0x11   : > { %p702_p12 = por %p90_p8, %p39_p3  ;;  %s113_s24 = sand.u32 1, %s617_s13  }
  0x12   : > { %s855_s22 = scalar_select %p698_p11, 1, 0 }
  0x13   : > { %s856_s23 = scalar_select %p702_p12, 1, 0 }
  0x14   : > { %s460_s25 = sshll.u32 %s621_s14, 10  ;;  %s447_s26 = sshll.u32 %s113_s24, 6 }
  0x15   : > { %s711_s29 = scalar_lea.hbm %s848_s0, %s460_s25  ;;  %s117_s30 = scalar_lea.vmem [#allocation3], %s447_s26 }
  0x16   : > { %s124_s3 = sshll.u32 %s117_s30, 4  ;;  %p715_p13 = pnand %p474_p10, %p687_p5  ;;  %s719_s3 = int_to_ptr.vmem [resolvable:$true] %s124_s3 }
  0x17   : > { %s721_s5 = scalar_lea.sflag [#allocation4], %s113_s24  ;;  %s529_s6 = scalar_lea.hbm %s711_s29, 1024 }
  0x18   : > { %p530_p0 = scmp.ne.s32.totalorder %s711_s29, %s529_s6  ;;  %p531_p1 = pneg %p715_p13 }
  0x19   : > { %s534_s9 = scalar_lea.hbm %s848_s0, 2048  ;;  %p535_p4 = scmp.lt.s32.totalorder %s711_s29, %s848_s0 }
  0x1a   : > { %p532_p2 = pnand %p531_p1, %p530_p0  ;;  %p536_p5 = scmp.lt.s32.totalorder %s534_s9, %s529_s6 }
  0x1c   : > { %p533_p3 = pneg %p532_p2  ;;  %p537_p7 = por %p536_p5, %p535_p4 }
  0x1e   : > { %p538_p8 = pnand %p537_p7, %p533_p3 }
  0x20   : > { %541 = shalt.err (!%p538_p8)
}
  0x21   : > { %s542_s17 = scalar_lea.vmem %s719_s3, 1024  ;;  %s623_s18 = smov [#allocation3]  }
  0x22   : > { %p543_p10 = scmp.ne.s32.totalorder %s719_s3, %s542_s17  ;;  %s547_s20 = sshll.u32 %s623_s18, 4  ;;  %s548_s20 = int_to_ptr.vmem [resolvable:$false] %s547_s20 }
  0x23   : > { %s549_s24 = scalar_lea.vmem %s548_s20, 2048  ;;  %p550_p2 = scmp.lt.s32.totalorder %s719_s3, %s548_s20 }
  0x24   : > { %p545_p9 = pnand %p543_p10, %p531_p1  ;;  %p551_p12 = scmp.lt.s32.totalorder %s549_s24, %s542_s17 }
  0x26   : > { %p546_p0 = pneg %p545_p9  ;;  %p552_p11 = por %p551_p12, %p550_p2 }
  0x28   : > { %p553_p6 = pnand %p552_p11, %p546_p0 }
  0x2a   : > { %556 = shalt.err (!%p553_p6)
}
  0x2b   : > { %s624_s25 = smov 256   ;;  %s625_s26 = smov 16  }
  0x2c   : > { %469 = dma.hbm_to_vmem [thread:$0]  (!%p715_p13), %s711_s29, 1024, %s719_s3, %s721_s5, %s624_s25, %s624_s25, %s625_s26  }
  0x2d   : > { %p450_p9 = scmp.ge.s32.totalorder %s621_s14, 1  ;;  %p132_p1 = scmp.lt.s32.totalorder %s621_s14, 3 }
  0x2f   : > { %p133_p3 = pnand %p450_p9, %p132_p1 }
  0x30   : > { %s745_s27 = sand.u32 (!%p133_p3), 1, %s613_s12   ;;  %p858_p6 = scmp.ne.s32.totalorder (!%p133_p3), %s854_s21, 0 }
  0x31   : > { %136 = sbr.rel (%p133_p3) target bundleno = 810 (0x32a), region = 28  ;;  %s451_s28 = sshll.u32 (!%p133_p3), %s745_s27, 6 }
  0x32   : > { %s139_s30 = scalar_lea.sflag (!%p133_p3), [#allocation4], %s745_s27  ;;  %s142_s6 = scalar_lea.vmem (!%p133_p3), [#allocation3], %s451_s28 }
  0x36   : > { %600 = dma.done.wait (%p858_p6), %s139_s30, 1024  }
  0x37   : > { %602 = vsyncadd (%p858_p6), %s139_s30, 4294966272  ;;  %v755_v0 = vld [vmem:[%s142_s6 + $0x28] sm:$0xff]  ;;  %v757_v1 = vld [vmem:[%s142_s6 + $0x38] sm:$0xff]  ;;  %vm225_vm0 = vcmask 261120   ;;  %v626_v44 = vmov 0   ;;  %s272_s21 = sld [smem:[#allocation2]] }
  0x38   : > { %v759_v2 = vld [vmem:[%s142_s6 + $0x20] sm:$0xff]  ;;  %v175_v3 = vpack.c.bf16 %v757_v1, %v755_v0  ;;  %v763_v4 = vld [vmem:[%s142_s6 + $0x30] sm:$0xff]  ;;  %v765_v5 = vld [vmem:[%s142_s6 + $0x8] sm:$0xff]  ;;  %311 = vmatprep.mubr.bf16.mxu1 %v626_v44  ;;  %s162_s29 = scalar_lea.vmem [#allocation6], %s451_s28  ;;  %s461_s4 = sshll.u32 %s669_s1, 10 }
  0x39   : > { %v767_v6 = vld [vmem:[%s142_s6 + $0x18] sm:$0xff]  ;;  %v174_v7 = vpack.c.bf16 %v763_v4, %v759_v2  ;;  %v773_v9 = vld [vmem:[%s142_s6] sm:$0xff]  ;;  %v775_v10 = vld [vmem:[%s142_s6 + $0x10] sm:$0xff]  ;;  %s371_s3 = sshll.u32 %s162_s29, 4  ;;  %s804_s8 = scalar_lea.hbm %s850_s2, %s461_s4  ;;  %s798_s3 = int_to_ptr.vmem [resolvable:$true] %s371_s3 }
  0x3a   : > { %v173_v8 = vpack.c.bf16 %v767_v6, %v765_v5  ;;  %188 = vmatprep.subr.bf16.mxu0 %v175_v3  ;;  %291 = vmatprep.subr.bf16.mxu1 %v175_v3  ;;  %v172_v11 = vpack.c.bf16 %v775_v10, %v773_v9  ;;  %s358_s1 = scalar_lea.sflag [#allocation5], %s745_s27  ;;  %s557_s9 = scalar_lea.vmem %s798_s3, 1024 }
  0x3b   : > { %189 = vmatpush1.bf16.xpose.msra.mxu0 %v174_v7  ;;  %292 = vmatpush1.bf16.msra.mxu1 %v174_v7  ;;  %p558_p11 = scmp.ne.s32.totalorder %s798_s3, %s557_s9  ;;  %p859_p12 = scmp.ne.s32.totalorder %s855_s22, 0 }
  0x3c   : > { %208 = vmatprep.mubr.bf16.mxu0 %v173_v8  ;;  %190 = vmatprep.subr.bf16.mxu0 %v173_v8  ;;  %s627_s10 = smov [#allocation6]  }
  0x3d   : > { %293 = vmatprep.subr.bf16.mxu1 %v173_v8  ;;  %v332_v59 = vstv %s272_s21  ;;  %p559_p13 = pnand %p558_p11, %p859_p12  ;;  %s561_s15 = sshll.u32 %s627_s10, 4  ;;  %s562_s15 = int_to_ptr.vmem [resolvable:$false] %s561_s15 }
  0x3e   : > { %s563_s17 = scalar_lea.vmem %s562_s15, 2048  ;;  %p564_p5 = scmp.lt.s32.totalorder %s798_s3, %s562_s15 }
  0x3f   : > { %294 = vmatpush1.bf16.msra.mxu1 %v172_v11  ;;  %p560_p4 = pneg %p559_p13  ;;  %p565_p7 = scmp.lt.s32.totalorder %s563_s17, %s557_s9 }
  0x41   : > { %p566_p8 = por %p565_p7, %p564_p5 }
  0x43   : > { %191 = vmatpush1.bf16.xpose.msra.mxu0 %v172_v11  ;;  %p567_p10 = pnand %p566_p8, %p560_p4 }
  0x4a   : > { %209 = vmatmul.mubr.bf16.vlgmr.msra.gmra.mxu0 %v172_v11 }
  0x4b   : > { %216 = vmatprep.mubr.bf16.mxu0 %v175_v3 }
  0x52   : > { %217 = vmatmul.mubr.bf16.gmra.mxu0 %v174_v7 }
 0x10a   : > { %v210_v12 = vpop.f32.mrf.mxu0 }
 0x10b   : > { %v226_v13 = vsel %vm225_vm0, %v210_v12, inf }
 0x10c   : > { %227 = vmin.xlane.f32.xlu0 %v226_v13  ;;  %v212_v14 = vpop.f32.mrf.mxu0 }
 0x10e   : > { %v213_v15 = vpop.f32.mrf.mxu0 }
 0x10f   : > { %v229_v16 = vsel %vm225_vm0, %v213_v15, inf }
 0x110   : > { %230 = vmin.xlane.f32.xlu0 %v229_v16  ;;  %v215_v17 = vpop.f32.mrf.mxu0 }
 0x112   : > { %v218_v18 = vpop.f32.mrf.mxu0 }
 0x113   : > { %v232_v19 = vsel %vm225_vm0, %v218_v18, inf }
 0x114   : > { %233 = vmin.xlane.f32.xlu1 %v232_v19  ;;  %v220_v20 = vpop.f32.mrf.mxu0 }
 0x116   : > { %v221_v21 = vpop.f32.mrf.mxu0 }
 0x117   : > { %v235_v22 = vsel %vm225_vm0, %v221_v21, inf }
 0x118   : > { %236 = vmin.xlane.f32.xlu1 %v235_v22  ;;  %v223_v23 = vpop.f32.mrf.mxu0 }
 0x195   : > { %v228_v24 = vpop.xlane.xlu0 %227 }
 0x196   : > { %v238_v25 = vsub.f32 %v228_v24, %v210_v12 }
 0x198   : > { %v242_v26 = vmul.f32 1.442695, %v238_v25 }
 0x199   : > { %v231_v27 = vpop.xlane.xlu0 %230 }
 0x19a   : > { %513 = vpow2.f32 %v242_v26  ;;  %v239_v28 = vsub.f32 %v231_v27, %v213_v15 }
 0x19c   : > { %v244_v29 = vmul.f32 1.442695, %v239_v28 }
 0x19d   : > { %v234_v30 = vpop.xlane.xlu1 %233 }
 0x19e   : > { %515 = vpow2.f32 %v244_v29  ;;  %v240_v31 = vsub.f32 %v234_v30, %v218_v18 }
 0x1a0   : > { %v246_v32 = vmul.f32 1.442695, %v240_v31 }
 0x1a1   : > { %v237_v33 = vpop.xlane.xlu1 %236 }
 0x1a2   : > { %517 = vpow2.f32 %v246_v32  ;;  %v241_v34 = vsub.f32 %v237_v33, %v221_v21 }
 0x1a4   : > { %v248_v35 = vmul.f32 1.442695, %v241_v34 }
 0x1a6   : > { %519 = vpow2.f32 %v248_v35 }
 0x1a7   : > { %v514_v36 = vpop.eup %513 }
 0x1a8   : > { %v250_v37 = vsel %vm225_vm0, %v514_v36, 0.0 }
 0x1a9   : > { %251 = vadd.xlane.f32.xlu0 %v250_v37 }
 0x1ab   : > { %v516_v38 = vpop.eup %515 }
 0x1ac   : > { %v253_v39 = vsel %vm225_vm0, %v516_v38, 0.0 }
 0x1ad   : > { %254 = vadd.xlane.f32.xlu1 %v253_v39 }
 0x1af   : > { %v518_v40 = vpop.eup %517 }
 0x1b0   : > { %v256_v41 = vsel %vm225_vm0, %v518_v40, 0.0 }
 0x1b1   : > { %257 = vadd.xlane.f32.xlu0 %v256_v41 }
 0x1b3   : > { %v520_v42 = vpop.eup %519 }
 0x1b4   : > { %v259_v43 = vsel %vm225_vm0, %v520_v42, 0.0 }
 0x1b5   : > { %260 = vadd.xlane.f32.xlu1 %v259_v43 }
 0x232   : > { %v252_v45 = vpop.xlane.xlu0 %251 }
 0x233   : > { %521 = vrcp.f32 %v252_v45 }
 0x236   : > { %v255_v46 = vpop.xlane.xlu1 %254 }
 0x237   : > { %523 = vrcp.f32 %v255_v46 }
 0x23a   : > { %v258_v47 = vpop.xlane.xlu0 %257 }
 0x23b   : > { %525 = vrcp.f32 %v258_v47 }
 0x23e   : > { %v261_v48 = vpop.xlane.xlu1 %260 }
 0x23f   : > { %527 = vrcp.f32 %v261_v48 }
 0x240   : > { %v522_v49 = vpop.eup %521 }
 0x241   : > { %v263_v51 = vmul.f32 %v522_v49, %v514_v36 }
 0x244   : > { %v524_v50 = vpop.eup %523 }
 0x245   : > { %v265_v52 = vmul.f32 %v524_v50, %v516_v38 }
 0x247   : > { %v270_v53 = vpack.c.bf16 %v265_v52, %v263_v51 }
 0x248   : > { %v526_v54 = vpop.eup %525 }
 0x249   : > { %453 = vmatmul.mubr.msk.bf16.vlgmr.msra.gmra.mxu1 %vm225_vm0, %v270_v53  ;;  %v267_v56 = vmul.f32 %v526_v54, %v518_v40 }
 0x24a   : > { %321 = vmatprep.mubr.bf16.mxu1 %v626_v44 }
 0x24c   : > { %v528_v55 = vpop.eup %527 }
 0x24d   : > { %v269_v57 = vmul.f32 %v528_v55, %v520_v42 }
 0x24f   : > { %v271_v58 = vpack.c.bf16 %v269_v57, %v267_v56 }
 0x251   : > { %454 = vmatmul.mubr.msk.bf16.gmra.mxu1 %vm225_vm0, %v271_v58 }
 0x309   : > { %v313_v60 = vpop.f32.mrf.mxu1 }
 0x30a   : > { %v333_v61 = vmul.f32 %v332_v59, %v313_v60 }
 0x30b   : > { %v315_v62 = vpop.f32.mrf.mxu1 }
 0x30c   : > { %v341_v63 = vadd.f32 %v333_v61, %v773_v9  ;;  %v334_v3 = vmul.f32 %v332_v59, %v315_v62 }
 0x30d   : > { %v317_v7 = vpop.f32.mrf.mxu1 }
 0x30e   : > { %349 = vst [vmem:[%s162_s29] sm:$0xff] %v341_v63  ;;  %v342_v8 = vadd.f32 %v334_v3, %v765_v5  ;;  %v335_v11 = vmul.f32 %v332_v59, %v317_v7 }
 0x30f   : > { %v319_v12 = vpop.f32.mrf.mxu1 }
 0x310   : > { %350 = vst [vmem:[%s162_s29 + $0x8] sm:$0xff] %v342_v8  ;;  %v343_v13 = vadd.f32 %v335_v11, %v775_v10  ;;  %v336_v14 = vmul.f32 %v332_v59, %v319_v12 }
 0x311   : > { %v323_v15 = vpop.f32.mrf.mxu1 }
 0x312   : > { %351 = vst [vmem:[%s162_s29 + $0x10] sm:$0xff] %v343_v13  ;;  %v344_v16 = vadd.f32 %v336_v14, %v767_v6  ;;  %v337_v17 = vmul.f32 %v332_v59, %v323_v15 }
 0x313   : > { %v325_v9 = vpop.f32.mrf.mxu1 }
 0x314   : > { %352 = vst [vmem:[%s162_s29 + $0x18] sm:$0xff] %v344_v16  ;;  %v345_v18 = vadd.f32 %v337_v17, %v759_v2  ;;  %v338_v19 = vmul.f32 %v332_v59, %v325_v9 }
 0x315   : > { %v327_v5 = vpop.f32.mrf.mxu1 }
 0x316   : > { %353 = vst [vmem:[%s162_s29 + $0x20] sm:$0xff] %v345_v18  ;;  %v346_v20 = vadd.f32 %v338_v19, %v755_v0  ;;  %v339_v21 = vmul.f32 %v332_v59, %v327_v5 }
 0x317   : > { %v329_v10 = vpop.f32.mrf.mxu1 }
 0x318   : > { %354 = vst [vmem:[%s162_s29 + $0x28] sm:$0xff] %v346_v20  ;;  %v347_v6 = vadd.f32 %v339_v21, %v763_v4  ;;  %v340_v2 = vmul.f32 %v332_v59, %v329_v10 }
 0x31a   : > { %355 = vst [vmem:[%s162_s29 + $0x30] sm:$0xff] %v347_v6  ;;  %v348_v0 = vadd.f32 %v340_v2, %v757_v1 }
 0x31c   : > { %356 = vst [vmem:[%s162_s29 + $0x38] sm:$0xff] %v348_v0 }
 0x31d   : > { %570 = shalt.err (!%p567_p10)
}
 0x31e   : > { %s571_s18 = scalar_lea.hbm %s804_s8, 1024  ;;  %s575_s25 = scalar_lea.hbm %s850_s2, 2048 }
 0x31f   : > { %p572_p0 = scmp.ne.s32.totalorder %s804_s8, %s571_s18  ;;  %p576_p1 = scmp.lt.s32.totalorder %s804_s8, %s850_s2 }
 0x320   : > { %p577_p3 = scmp.lt.s32.totalorder %s575_s25, %s571_s18 }
 0x321   : > { %p573_p2 = pnand %p572_p0, %p859_p12 }
 0x322   : > { %p578_p6 = por %p577_p3, %p576_p1 }
 0x323   : > { %p574_p9 = pneg %p573_p2 }
 0x325   : > { %p579_p11 = pnand %p578_p6, %p574_p9 }
 0x327   : > { %582 = shalt.err (!%p579_p11)
}
 0x328   : > { %s628_s30 = smov 256   ;;  %s629_s6 = smov 16  }
 0x329   : > { %464 = dma.vmem_to_hbm [thread:$0]  (%p859_p12), %s798_s3, 1024, %s804_s8, %s358_s1, %s628_s30, %s628_s30, %s629_s6  }
 0x32a PF: > { %s386_s21 = sand.u32 1, %s609_s11   ;;  %p860_p13 = scmp.ne.s32.totalorder %s856_s23, 0 }
 0x32b   : > { %p861_p4 = scmp.ge.s32.totalorder %s621_s14, 2  ;;  %s387_s29 = scalar_lea.sflag [#allocation5], %s386_s21 }
 0x32d   : > { %p471_p5 = pnand %p861_p4, %p860_p13 }
 0x32f   : > { %p472_p7 = pneg %p471_p5 }
 0x331   : > { %604 = dma.done.wait (%p472_p7), %s387_s29, 1024  }
 0x332   : > { %606 = vsyncadd (%p472_p7), %s387_s29, 4294966272  ;;  %p16_p8 = scmp.ge.s32.totalorder %s673_s16, 4   ;;  %s862_s11 = smov %s613_s12 }
 0x333   : > { %s863_s12 = smov %s617_s13  ;;  %s864_s13 = smov %s685_s19 }
 0x334   : > { %s865_s14 = smov %s673_s16  ;;  %18 = sbr.rel (!%p16_p8) target bundleno = 7 (0x7), region = 73 }
 0x339   :  { %392 = vsyncpa [#allocation4], 1 }
 0x33a   :  { %394 = vsyncpa [#allocation4 + $0x1], 1 }
 0x33b   :  { %395 = vsyncpa [#allocation5], 1 }
 0x33c   :  { %397 = vsyncpa [#allocation5 + $0x1], 1 }

</bundles_post_ra>
